<compile_context>
chip_gen: v6e
topology: v6e:2x2x1
jax: 0.10.0
libtpu: 0.0.40
codegen_flags: <defaults>
</compile_context>

<pallas_src>
import functools
import math

import jax
import jax.numpy as jnp
from jax.experimental import pallas as pl
from jax.experimental.pallas import tpu as pltpu

TOKENS_PER_BLOCK = 256   # max tokens gathered per grid step


def token_embedding_kernel(ids_ref, table_ref, o_ref, sem, *, scale, tb, vocab):
    """DMA row-gather embedding lookup.

    ids_ref   : SMEM (T_pad,) int32        -- all token ids (scalar prefetch)
    table_ref : HBM  (V, E)   table dtype  -- embedding table, never VMEM-resident
    o_ref     : VMEM (tb, E)  table dtype  -- output block for this token block
    sem       : scalar DMA semaphore shared by the tb equal-sized row copies
    """
    base = pl.program_id(0) * tb

    @pl.loop(0, tb)
    def _issue(t):
        # TODO(synk): out-of-range ids are clamped instead of raising like
        # nn.Embedding; inputs are assumed in-range.
        row = jnp.clip(ids_ref[base + t], 0, vocab - 1)
        pltpu.make_async_copy(table_ref.at[pl.ds(row, 1), :],
                              o_ref.at[pl.ds(t, 1), :],
                              sem).start()

    @pl.loop(0, tb)
    def _drain(t):
        # Same-shaped descriptor: each wait retires one (1, E) row copy.
        pltpu.make_async_copy(table_ref.at[pl.ds(0, 1), :],
                              o_ref.at[pl.ds(t, 1), :],
                              sem).wait()

    # sqrt(emb_size) scaling: one cheap VPU pass over the gathered block.
    o_ref[...] = o_ref[...] * scale


def token_embedding(tokens: jax.Array, table: jax.Array,
                    *, tb: int = TOKENS_PER_BLOCK):
    """tokens: (B, S) int, table: (V, E) -> (B, S, E) = table[tokens] * sqrt(E)."""
    B, S = tokens.shape
    V, E = table.shape
    T = B * S
    scale = math.sqrt(E)

    # Keep >= 2 token blocks when possible (feeds both v7x TensorCores) while
    # never exceeding the requested block size; block sublane dim stays 8-aligned.
    tb = min(tb, max(8, 8 * pl.cdiv(pl.cdiv(T, 2), 8)))
    t_blocks = pl.cdiv(T, tb)
    T_pad = t_blocks * tb

    flat = tokens.reshape(T).astype(jnp.int32)
    if T_pad != T:
        flat = jnp.pad(flat, (0, T_pad - T))      # pad ids = 0; rows sliced off below

    out_flat = pl.pallas_call(
        functools.partial(token_embedding_kernel, scale=scale, tb=tb, vocab=V),
        out_shape=jax.ShapeDtypeStruct((T_pad, E), table.dtype),
        grid_spec=pltpu.PrefetchScalarGridSpec(
            num_scalar_prefetch=1,                 # flat ids -> SMEM
            grid=(t_blocks,),
            in_specs=[pl.BlockSpec(memory_space=pl.ANY)],   # table stays in HBM
            out_specs=pl.BlockSpec((tb, E), lambda i, ids: (i, 0)),
            scratch_shapes=[pltpu.SemaphoreType.DMA],
        ),
        compiler_params=pltpu.CompilerParams(
            dimension_semantics=("parallel",)),
    )(flat, table)

    return out_flat[:T].reshape(B, S, E)


if __name__ == "__main__":
    key = jax.random.PRNGKey(0)
    k_table, k_tok = jax.random.split(key)

    vocab_size, emb_size = 64, 128
    B, S = 2, 8

    # deterministic "parameters" (nn.Embedding weight equivalent)
    embedding_weight = jax.random.normal(
        k_table, (vocab_size, emb_size), dtype=jnp.float32)
    tokens = jax.random.randint(k_tok, (B, S), 0, vocab_size, dtype=jnp.int32)

    out = token_embedding(tokens, embedding_weight)
    out = jax.block_until_ready(out)

    # reference: embedding lookup * sqrt(emb_size)
    ref = embedding_weight[tokens] * math.sqrt(emb_size)
    assert out.shape == (B, S, emb_size)
    assert out.dtype == jnp.float32
    assert jnp.allclose(out, ref, atol=1e-4, rtol=1e-5), float(
        jnp.max(jnp.abs(out - ref)))

    print("KERNEL_OK")
</pallas_src>

<mosaic_0001>
module attributes {stable_mosaic.version = 11 : i64} {
  func.func @token_embedding_kernel(%arg0: i32, %arg1: memref<16xi32, #tpu.memory_space<smem>>, %arg2: memref<64x128xf32, #tpu.memory_space<any>>, %arg3: memref<8x128xf32, #tpu.memory_space<vmem>>, %arg4: memref<!tpu.dma_semaphore, #tpu.memory_space<semaphore_mem>>) attributes {dimension_semantics = [#tpu.dimension_semantics<parallel>], iteration_bounds = array<i64: 2>, scalar_prefetch = 1 : i64, scratch_operands = 1 : i64, tpu.core_type = #tpu.core_type<tc>, window_params = [{}, {transform_indices = @transform_1, window_bounds = array<i64: 8, 128>}]} {
    %c8_i32 = arith.constant 8 : i32
    %0 = arith.muli %arg0, %c8_i32 : i32
    %c0_i32 = arith.constant 0 : i32
    %c8_i32_0 = arith.constant 8 : i32
    %1 = arith.addi %c0_i32, %c8_i32_0 : i32
    %c1_i32 = arith.constant 1 : i32
    scf.for %arg5 = %c0_i32 to %1 step %c1_i32  : i32 {
      %c1_i32_9 = arith.constant 1 : i32
      %7 = arith.muli %arg5, %c1_i32_9 : i32
      %c0_i32_10 = arith.constant 0 : i32
      %8 = arith.addi %c0_i32_10, %7 : i32
      %9 = arith.addi %0, %8 : i32
      %10 = arith.index_cast %9 : i32 to index
      %11 = memref.load %arg1[%10] : memref<16xi32, #tpu.memory_space<smem>>
      %c0_i32_11 = arith.constant 0 : i32
      %c63_i32 = arith.constant 63 : i32
      %12 = arith.maxsi %c0_i32_11, %11 : i32
      %13 = arith.minsi %c63_i32, %12 : i32
      %c0_i32_12 = arith.constant 0 : i32
      %14 = tpu.memref_slice %arg2[%13, %c0_i32_12] : memref<64x128xf32, #tpu.memory_space<any>> -> memref<1x128xf32, #tpu.memory_space<any>>
      %c0_i32_13 = arith.constant 0 : i32
      %15 = tpu.memref_slice %arg3[%8, %c0_i32_13] : memref<8x128xf32, #tpu.memory_space<vmem>> -> memref<1x128xf32, #tpu.memory_space<vmem>>
      tpu.enqueue_dma source(%14 : memref<1x128xf32, #tpu.memory_space<any>>) target(%15 : memref<1x128xf32, #tpu.memory_space<vmem>>) target_semaphore(%arg4 : memref<!tpu.dma_semaphore, #tpu.memory_space<semaphore_mem>>)
    }
    %c8_i32_1 = arith.constant 8 : i32
    %c0_i32_2 = arith.constant 0 : i32
    %c8_i32_3 = arith.constant 8 : i32
    %2 = arith.addi %c0_i32_2, %c8_i32_3 : i32
    %c1_i32_4 = arith.constant 1 : i32
    scf.for %arg5 = %c0_i32_2 to %2 step %c1_i32_4  : i32 {
      %c1_i32_9 = arith.constant 1 : i32
      %7 = arith.muli %arg5, %c1_i32_9 : i32
      %c0_i32_10 = arith.constant 0 : i32
      %8 = arith.addi %c0_i32_10, %7 : i32
      %c0_i32_11 = arith.constant 0 : i32
      %c0_i32_12 = arith.constant 0 : i32
      %9 = tpu.memref_slice %arg2[%c0_i32_11, %c0_i32_12] : memref<64x128xf32, #tpu.memory_space<any>> -> memref<1x128xf32, #tpu.memory_space<any>>
      %c0_i32_13 = arith.constant 0 : i32
      %10 = tpu.memref_slice %arg3[%8, %c0_i32_13] : memref<8x128xf32, #tpu.memory_space<vmem>> -> memref<1x128xf32, #tpu.memory_space<vmem>>
      tpu.wait_dma2 semaphore(%arg4 : memref<!tpu.dma_semaphore, #tpu.memory_space<semaphore_mem>>) src(%9 : memref<1x128xf32, #tpu.memory_space<any>>) dst(%10 : memref<1x128xf32, #tpu.memory_space<vmem>>)
    }
    %c8_i32_5 = arith.constant 8 : i32
    %c0 = arith.constant 0 : index
    %c0_6 = arith.constant 0 : index
    %3 = vector.load %arg3[%c0, %c0_6] : memref<8x128xf32, #tpu.memory_space<vmem>>, vector<8x128xf32>
    %cst = arith.constant 11.3137083 : f32
    %4 = vector.broadcast %cst : f32 to vector<8x128xf32>
    %5 = arith.mulf %3, %4 : vector<8x128xf32>
    %c0_7 = arith.constant 0 : index
    %c0_8 = arith.constant 0 : index
    %6 = vector.load %arg3[%c0_7, %c0_8] : memref<8x128xf32, #tpu.memory_space<vmem>>, vector<8x128xf32>
    tpu.vector_store %arg3[%c0_7, %c0_8], %5 {strides = array<i32>} : memref<8x128xf32, #tpu.memory_space<vmem>>, vector<8x128xf32>,
    return
  }
  func.func @transform_1(%arg0: i32, %arg1: memref<16xi32, #tpu.memory_space<smem>>) -> (i32, i32) {
    %c0_i32 = arith.constant 0 : i32
    %c0_i32_0 = arith.constant 0 : i32
    return %arg0, %c0_i32 : i32, i32
  }
}

</mosaic_0001>

<bundles_post_ra>
// kernel: tpu_custom_call.1
= control target key start
LH: loop header
LB: loop body
LE: loop exit
PB: predicated region body
PF: predicated region fallthrough
CT: control target
= control target key end

     0   :  { %s337_s9 = smov [#allocation4]   ;;  %s466_s0 = inlined_call_operand.hbm [shape: s32[16], index: 0, kind: input, shape index: {}]   ;;  %s467_s1 = inlined_call_operand.hbm [shape: f32[64,128], index: 1, kind: input, shape index: {}]   ;;  %s468_s2 = inlined_call_operand.hbm [shape: f32[16,128], index: 2, kind: output, shape index: {}]  }
   0x1   :  { %8 = dma.hbm_to_smem %s466_s0, 16, %s337_s9, [#allocation3] }
   0x2   :  { %309 = dma.done.wait [#allocation3], 16 }
   0x3   :  { %310 = vsyncadd [#allocation3], 4294967280 }
   0x4   :  { %10 = sfence }
   0x5   :  { %11 = vsyncpa [#allocation6], 0 }
   0x6   :  { %13 = vsyncpa [#allocation6 + $0x1], 0  ;;  %s357_s12 = smov 0   ;;  %s359_s13 = smov 0  }
   0x7   :  { %s361_s14 = smov 0  }
   0x8 LB: > { %s167_s0 = sadd.s32 4294967295, %s327_s14   ;;  %s374_s15 = sadd.s32 1, %s327_s14   ;;  %s327_s14 = sphi %s361_s14, %s473_s14   ;;  %s323_s13 = sphi %s359_s13, %s472_s13   ;;  %s319_s12 = sphi %s357_s12, %s471_s12  }
   0x9   : > { %s22_s16 = ssub.s32 %s327_s14, %s374_s15  ;;  %s25_s17 = sadd.s32 1, %s323_s13 }
   0xa   : > { %p23_p0 = scmp.eq.s32.totalorder %s22_s16, 0  ;;  %p168_p1 = scmp.ne.s32.totalorder %s22_s16, 0 }
   0xb   : > { %p29_p2 = scmp.eq.s32.totalorder %s327_s14, 1  ;;  %p34_p3 = scmp.ne.s32.totalorder %s323_s13, %s319_s12 }
   0xc   : > { %s383_s18 = scalar_select %p23_p0, %s323_s13, %s25_s17  }
   0xd   : > { %p385_p4 = por %p168_p1, %p29_p2  ;;  %p35_p5 = scmp.eq.s32.totalorder %s167_s0, 1 }
   0xe   : > { %p169_p7 = scmp.ge.s32.totalorder %s327_s14, 2 }
   0xf   : > { %p389_p6 = por %p35_p5, %p34_p3  ;;  %s49_s21 = sand.u32 (!%p169_p7), 1, %s323_s13  }
  0x10   : > { %44 = sbr.rel (%p169_p7) target bundleno = 87 (0x57), region = 12  ;;  %s171_s22 = sshll.u32 (!%p169_p7), %s327_s14, 3 }
  0x11   : > { %s170_s23 = sshll.u32 (!%p169_p7), %s49_s21, 3  ;;  %s400_s25 = smov (!%p169_p7), 0  }
  0x12   : > { %s398_s24 = scalar_lea.vmem (!%p169_p7), [#allocation5], %s170_s23 }
  0x15 LB: >> { %s59_s26 = sadd.s32 %s331_s25, %s171_s22  ;;  %s67_s28 = scalar_lea.vmem %s398_s24, %s331_s25 [#allocation5]  ;;  %s331_s25 = sphi %s400_s25, %s58_s25  }
  0x16   : >> { %s60_s27 = sld [smem:[#allocation4 + %s59_s26]]  ;;  %s75_s29 = sshll.u32 %s67_s28, 4  ;;  %s76_s29 = int_to_ptr.vmem [resolvable:$true] %s75_s29 }
  0x17   : >> { %s243_s9 = scalar_lea.hbm %s467_s1, 1024 }
  0x1c   : >> { %p61_p8 = scmp.gt.s32.totalorder %s60_s27, 0  ;;  %p172_p9 = scmp.lt.s32.totalorder %s60_s27, 63 }
  0x1e   : >> { %s475_s27 = smov (!%p61_p8, %s60_s27), 0 }
  0x1f   : >> { %s477_s27 = smov (!%p172_p9, %s475_s27), 63 }
  0x20   : >> { %s177_s30 = sshll.u32 %s477_s27, 4 }
  0x21   : >> { %s66_s5 = scalar_lea.hbm %s467_s1, %s177_s30 }
  0x22   : >> { %s241_s6 = scalar_lea.hbm %s66_s5, 16  ;;  %p244_p11 = scmp.lt.s32.totalorder %s66_s5, %s467_s1 }
  0x23   : >> { %p242_p10 = scmp.ne.s32.totalorder %s66_s5, %s241_s6  ;;  %p245_p12 = scmp.lt.s32.totalorder %s243_s9, %s241_s6 }
  0x25   : >> { %p246_p13 = por %p245_p12, %p244_p11 }
  0x27   : >> { %p247_p0 = pnand %p246_p13, %p242_p10 }
  0x29   : >> { %250 = shalt.err (!%p247_p0)  }
  0x2a   : >> { %s251_s0 = scalar_lea.vmem %s76_s29, 16  ;;  %s338_s16 = smov [#allocation5]  }
  0x2b   : >> { %p252_p1 = scmp.ne.s32.totalorder %s76_s29, %s251_s0  ;;  %s253_s17 = sshll.u32 %s338_s16, 4  ;;  %s419_s17 = int_to_ptr.vmem [resolvable:$false] %s253_s17 }
  0x2c   : >> { %s255_s23 = scalar_lea.vmem %s419_s17, 256  ;;  %p256_p2 = scmp.lt.s32.totalorder %s76_s29, %s419_s17 }
  0x2d   : >> { %p257_p3 = scmp.lt.s32.totalorder %s255_s23, %s251_s0 }
  0x2f   : >> { %p258_p5 = por %p257_p3, %p256_p2 }
  0x31   : >> { %p259_p7 = pnand %p258_p5, %p252_p1 }
  0x33   : >> { %262 = shalt.err (!%p259_p7)  }
  0x34   : >> { %78 = dma.hbm_to_vmem [thread:$0]  %s66_s5, 16, %s76_s29, [#allocation2] }
  0x35   : >> { %s58_s25 = sadd.s32 1, %s331_s25  }
  0x36   : >> { %p55_p8 = scmp.ge.s32.totalorder %s58_s25, 8  }
  0x37   : > { %s333_s26 = smov (%p55_p8), 0  }
  0x38   : > { %57 = sbr.rel (!%p55_p8) target bundleno = 21 (0x15), region = 64 }
  0x3d LB: >> { %311 = dma.done.wait [#allocation2], 16  ;;  %s335_s26 = sphi %s333_s26, %s84_s26  }
  0x3e   : >> { %312 = vsyncadd [#allocation2], 4294967280  ;;  %s84_s26 = sadd.s32 1, %s335_s26  }
  0x3f   : >> { %p81_p9 = scmp.ge.s32.totalorder %s84_s26, 8  }
  0x40   : > { %v88_v0 = vld [vmem:[%s398_s24] sm:$0xff] (%p81_p9)  ;;  %s179_s25 = sshll.u32 (%p81_p9), %s327_s14, 7  ;;  %s105_s29 = sshll.u32 (%p81_p9), %s398_s24, 4  ;;  %s106_s29 = int_to_ptr.vmem [resolvable:$true] %s105_s29 }
  0x41   : > { %83 = sbr.rel (!%p81_p9) target bundleno = 61 (0x3d), region = 75  ;;  %v89_v1 = vmul.f32 (%p81_p9), 11.313708, %v88_v0  ;;  %s103_s28 = scalar_lea.hbm (%p81_p9), %s468_s2, %s179_s25 }
  0x42   : > { %s92_s30 = scalar_lea.sflag (%p81_p9), [#allocation6], %s49_s21  ;;  %s263_s3 = scalar_lea.vmem (%p81_p9), %s106_s29, 128 }
  0x43   : > { %90 = vst [vmem:[%s398_s24] sm:$0xff] (%p81_p9), %v89_v1  ;;  %p264_p10 = scmp.ne.s32.totalorder (%p81_p9), %s106_s29, %s263_s3  ;;  %p270_p13 = scmp.lt.s32.totalorder (%p81_p9), %s106_s29, %s419_s17 }
  0x44   : > { %p271_p0 = scmp.lt.s32.totalorder (%p81_p9), %s255_s23, %s263_s3 }
  0x45   : > { %p265_p11 = pnand (%p81_p9), %p264_p10, %p385_p4 }
  0x46   : > { %p272_p1 = por %p271_p0, %p270_p13 }
  0x47   : > { %p266_p12 = pneg %p265_p11 }
  0x49   : > { %p273_p2 = pnand %p272_p1, %p266_p12 }
  0x4b   : > { %276 = shalt.err (!%p273_p2)
}
  0x4c   : > { %s277_s4 = scalar_lea.hbm %s103_s28, 128  ;;  %s281_s21 = scalar_lea.hbm %s468_s2, 256 }
  0x4d   : > { %p278_p3 = scmp.ne.s32.totalorder %s103_s28, %s277_s4  ;;  %p282_p8 = scmp.lt.s32.totalorder %s103_s28, %s468_s2 }
  0x4e   : > { %p283_p9 = scmp.lt.s32.totalorder %s281_s21, %s277_s4 }
  0x4f   : > { %p279_p5 = pnand %p278_p3, %p385_p4 }
  0x50   : > { %p284_p10 = por %p283_p9, %p282_p8 }
  0x51   : > { %p280_p7 = pneg %p279_p5 }
  0x53   : > { %p285_p11 = pnand %p284_p10, %p280_p7 }
  0x55   : > { %288 = shalt.err (!%p285_p11)
}
  0x56   : > { %185 = dma.vmem_to_hbm [thread:$0]  (%p385_p4), %s106_s29, 128, %s103_s28, %s92_s30  }
  0x57 PF: > { %p191_p12 = scmp.ge.s32.totalorder %s327_s14, 1  ;;  %s117_s8 = sand.u32 1, %s319_s12  }
  0x58   : > { %s118_s9 = scalar_lea.sflag [#allocation6], %s117_s8 }
  0x59   : > { %p188_p13 = pnand %p191_p12, %p389_p6 }
  0x5b   : > { %p189_p0 = pneg %p188_p13 }
  0x5d   : > { %314 = dma.done.wait (%p189_p0), %s118_s9, 128  }
  0x5e   : > { %316 = vsyncadd (%p189_p0), %s118_s9, 4294967168  ;;  %p16_p1 = scmp.ge.s32.totalorder %s374_s15, 3   ;;  %s471_s12 = smov %s323_s13 }
  0x5f   : > { %s472_s13 = smov %s383_s18  ;;  %s473_s14 = smov %s374_s15 }
  0x60   :  { %18 = sbr.rel (!%p16_p1) target bundleno = 8 (0x8), region = 86 }
  0x65   :  { %123 = vsyncpa [#allocation6], 1 }
  0x66   :  { %125 = vsyncpa [#allocation6 + $0x1], 1 }
  0x67   :  { %126 = vsyncmov [#allocation2] }
  0x6a   :  { %s127_s14 = vpop.sfrf %126 }
  0x6b   :  { %p182_p4 = scmp.ne.s32.totalorder %s127_s14, 0 }
  0x6d   :  { %131 = shalt.err (%p182_p4)  }

</bundles_post_ra>
